<compile_context>
chip_gen: v6e
topology: v6e:2x2x1
jax: 0.10.0
libtpu: 0.0.40
codegen_flags: <defaults>
</compile_context>

<pallas_src>
import functools

import jax
import jax.numpy as jnp
import numpy as np
from jax import lax
from jax.experimental import pallas as pl
from jax.experimental.pallas import tpu as pltpu


def _round_up(x, m):
    return ((x + m - 1) // m) * m


def _pick_tile(total, candidates=(512, 256, 128)):
    # total is a multiple of 128, so 128 always qualifies.
    for t in candidates:
        if t <= total and total % t == 0:
            return t
    return total


# ---------------------------------------------------------------------------
# Fused kernel:
#   accumulate  o += adj_tile(bf16) @ (x_tile @ W^T -> bf16)   over K tiles
#   epilogue    +bias -> L2-normalize -> ReLU -> BatchNorm1d(N) -> softmax
# Grid = (node tiles [parallel], contraction tiles over nodes [arbitrary]).
# ---------------------------------------------------------------------------
def _assign_kernel(adj_ref, x_ref, wt_ref, b_ref, o_ref, *, batch, n_assign):
    k = pl.program_id(1)
    nk = pl.num_programs(1)

    @pl.when(k == 0)
    def _init():
        o_ref[...] = jnp.zeros_like(o_ref)

    # Fused Linear: xw_k = x_k @ W^T (f32 matmul for precision, result emitted as bf16
    # so the dominant adjacency matmul runs at the bf16 MXU rate).
    Bb, TKb, Fb = x_ref.shape
    x2 = x_ref[...].reshape(Bb * TKb, Fb)
    xw = jnp.dot(x2, wt_ref[...], preferred_element_type=jnp.float32)
    xw = xw.reshape(Bb, TKb, -1).astype(jnp.bfloat16)

    # Aggregation in the small padded assignment space, f32 accumulation into the
    # resident output block.
    o_ref[...] += jnp.einsum(
        "bik,bko->bio", adj_ref[...], xw, preferred_element_type=jnp.float32
    )

    @pl.when(k == nk - 1)
    def _epilogue():
        h = o_ref[...] + b_ref[...]          # bias added once, after aggregation

        # F.normalize(h, p=2, dim=2): zero pad lanes do not change the norm.
        ss = jnp.sum(h * h, axis=-1, keepdims=True)
        h = h * jnp.minimum(lax.rsqrt(ss), 1e12)   # == h / max(||h||, 1e-12)

        h = jnp.maximum(h, 0.0)              # ReLU

        # BatchNorm1d(N), training-mode batch stats over (batch, feature) per node,
        # gamma=1 / beta=0.  Single pass: var = E[x^2] - mean^2 (post-ReLU values are
        # in [0,1], cancellation benign).  Zero pad lanes contribute nothing to the
        # sums; divide by the true count B * nnext.
        inv_cnt = 1.0 / float(batch * n_assign)
        s1 = jnp.sum(jnp.sum(h, axis=2, keepdims=True), axis=0, keepdims=True)
        s2 = jnp.sum(jnp.sum(h * h, axis=2, keepdims=True), axis=0, keepdims=True)
        mean = s1 * inv_cnt                  # (1, TN, 1)
        var = s2 * inv_cnt - mean * mean
        h = (h - mean) * lax.rsqrt(var + 1e-5)

        # Mask pad lanes with a large negative so softmax gives them exactly zero weight.
        lane = lax.broadcasted_iota(jnp.int32, h.shape, 2)
        h = jnp.where(lane < n_assign, h, -1e30)

        # Softmax with an EXACT reciprocal (division): rows must be truly row-stochastic;
        # the approximate EUP reciprocal previously broke the row-sum invariant, and the
        # epilogue is nowhere near the critical path.
        m = jnp.max(h, axis=-1, keepdims=True)
        e = jnp.exp(h - m)
        o_ref[...] = (e / jnp.sum(e, axis=-1, keepdims=True)).astype(o_ref.dtype)


def diffpool_assignment(x, adj, w, b):
    """x: (B, N, nfeat), adj: (B, N, N), w: (nnext, nfeat), b: (nnext,) -> (B, N, nnext)."""
    B, N, F = x.shape
    O = w.shape[0]
    OP = _round_up(O, 128)                   # lane-dense padded assignment dim
    NP = _round_up(N, 128)                   # padded node dim (rows and contraction)

    # Zero-padded, transposed weight and bias (pad lanes stay exactly zero downstream).
    wt = jnp.zeros((F, OP), jnp.float32).at[:, :O].set(w.T.astype(jnp.float32))
    bp = jnp.zeros((1, OP), jnp.float32).at[0, :O].set(b.astype(jnp.float32))

    # adj streamed in bf16 (binary/self-loop adjacency values are exact in bf16); x kept
    # f32 (its HBM stream is ~2F/TN of the adj stream, negligible for typical nfeat).
    xf = x.astype(jnp.float32)
    adjb = adj.astype(jnp.bfloat16)
    if NP != N:
        xf = jnp.zeros((B, NP, F), jnp.float32).at[:, :N, :].set(xf)
        adjb = jnp.zeros((B, NP, NP), jnp.bfloat16).at[:, :N, :N].set(adjb)

    # Tile selection: big 512-class tiles, always exact divisors of the padded node dim.
    TK = _pick_tile(NP)                      # contraction tile (multiple of 128)
    TN = _pick_tile(NP)                      # node/output-row tile (multiple of 8)

    def _est(tn, tk):
        blk = (B * tn * tk * 2               # adj tile (bf16)
               + B * tk * F * 4              # x tile (f32)
               + F * OP * 4                  # resident W^T
               + OP * 4                      # resident bias
               + B * tn * OP * 4)            # resident output/accumulator block
        # double-buffered blocks + epilogue temporaries (h, h^2, e, masks ...) + slack
        return 2 * blk + 6 * B * tn * OP * 4 + (2 << 20)

    while _est(TN, TK) > (44 << 20) and TK > 128:
        TK //= 2
    while _est(TN, TK) > (44 << 20) and TN > 128:
        TN //= 2
    # Give the "parallel" node-tile axis >= 2 steps when possible (v7x megacore).
    if NP // TN < 2 and TN >= 16:
        TN //= 2

    vmem = int(min(48 << 20, max(_est(TN, TK), 16 << 20)))
    grid = (NP // TN, NP // TK)

    kernel = functools.partial(_assign_kernel, batch=B, n_assign=O)
    out_padded = pl.pallas_call(
        kernel,
        grid=grid,
        in_specs=[
            pl.BlockSpec((B, TN, TK), lambda i, k: (0, i, k)),   # adj tile (bf16)
            pl.BlockSpec((B, TK, F), lambda i, k: (0, k, 0)),    # x tile
            pl.BlockSpec((F, OP), lambda i, k: (0, 0)),          # W^T, resident in VMEM
            pl.BlockSpec((1, OP), lambda i, k: (0, 0)),          # bias, resident
        ],
        out_specs=pl.BlockSpec((B, TN, OP), lambda i, k: (0, i, 0)),
        out_shape=jax.ShapeDtypeStruct((B, NP, OP), jnp.float32),
        compiler_params=pltpu.CompilerParams(
            dimension_semantics=("parallel", "arbitrary"),
            vmem_limit_bytes=vmem,
        ),
    )(adjb, xf, wt, bp)

    # If downstream can consume the lane/row-padded layout this slice can be dropped.
    return out_padded[:, :N, :O]


def _reference(x, adj, w, b, matmul_dtype=jnp.float32):
    # Pure-JAX reference.  matmul_dtype=bfloat16 mirrors the kernel's mixed-precision
    # data path (bf16 operands, f32 accumulation); float32 is the exact module math.
    xw = jnp.einsum("bnf,of->bno", x, w).astype(matmul_dtype).astype(jnp.float32)
    adj_m = adj.astype(matmul_dtype).astype(jnp.float32)
    h = jnp.einsum("bij,bjo->bio", adj_m, xw) + b[None, None, :]
    norm = jnp.sqrt(jnp.sum(h * h, axis=-1, keepdims=True))
    h = h / jnp.maximum(norm, 1e-12)
    h = jnp.maximum(h, 0.0)
    mean = jnp.mean(h, axis=(0, 2), keepdims=True)
    var = jnp.mean((h - mean) ** 2, axis=(0, 2), keepdims=True)
    h = (h - mean) / jnp.sqrt(var + 1e-5)
    return jax.nn.softmax(h, axis=-1)


if __name__ == "__main__":
    B, N, nfeat, nnext = 2, 8, 16, 4

    key = jax.random.PRNGKey(0)
    kx, kadj, kw, kb = jax.random.split(key, 4)

    x = jax.random.normal(kx, (B, N, nfeat), dtype=jnp.float32)
    adj = (jax.random.uniform(kadj, (B, N, N)) > 0.5).astype(jnp.float32)
    adj = adj + jnp.eye(N, dtype=jnp.float32)[None]  # self loops, avoid empty rows

    # Deterministic parameter init mimicking PyTorch:
    #   W: xavier_uniform with gain = calculate_gain('relu') = sqrt(2)
    #   b: uniform(-1/sqrt(fan_in), 1/sqrt(fan_in))  (nn.Linear default)
    gain = np.sqrt(2.0)
    bound_w = gain * np.sqrt(6.0 / (nfeat + nnext))
    w = jax.random.uniform(kw, (nnext, nfeat), minval=-bound_w, maxval=bound_w,
                           dtype=jnp.float32)
    bound_b = 1.0 / np.sqrt(nfeat)
    b = jax.random.uniform(kb, (nnext,), minval=-bound_b, maxval=bound_b,
                           dtype=jnp.float32)

    s_l = jax.block_until_ready(diffpool_assignment(x, adj, w, b))
    assert s_l.shape == (B, N, nnext)

    # Rows of the assignment matrix are truly row-stochastic (exact softmax division).
    assert np.allclose(np.asarray(jnp.sum(s_l, axis=-1)), 1.0, atol=1e-5)

    # Tight check against a reference with matching mixed-precision matmul numerics.
    ref_bf16 = _reference(x, adj, w, b, matmul_dtype=jnp.bfloat16)
    assert np.allclose(np.asarray(s_l), np.asarray(ref_bf16), atol=3e-3, rtol=3e-3)

    # Looser semantic check against the pure-f32 module math (covers bf16 rounding).
    ref_f32 = _reference(x, adj, w, b, matmul_dtype=jnp.float32)
    assert np.allclose(np.asarray(s_l), np.asarray(ref_f32), atol=3e-2, rtol=3e-2)

    print("KERNEL_OK")
</pallas_src>

<mosaic_0001>
module attributes {stable_mosaic.version = 11 : i64} {
  func.func @_assign_kernel(%arg0: i32, %arg1: i32, %arg2: memref<2x64x128xbf16, #tpu.memory_space<vmem>>, %arg3: memref<2x128x16xf32, #tpu.memory_space<vmem>>, %arg4: memref<16x128xf32, #tpu.memory_space<vmem>>, %arg5: memref<1x128xf32, #tpu.memory_space<vmem>>, %arg6: memref<2x64x128xf32, #tpu.memory_space<vmem>>) attributes {dimension_semantics = [#tpu.dimension_semantics<parallel>, #tpu.dimension_semantics<arbitrary>], iteration_bounds = array<i64: 2, 1>, scalar_prefetch = 0 : i64, scratch_operands = 0 : i64, tpu.core_type = #tpu.core_type<tc>, window_params = [{transform_indices = @transform_0, window_bounds = array<i64: 2, 64, 128>}, {transform_indices = @transform_1, window_bounds = array<i64: 2, 128, 16>}, {pipeline_mode = #tpu.pipeline_mode<synchronous>, transform_indices = @transform_2, window_bounds = array<i64: 16, 128>}, {pipeline_mode = #tpu.pipeline_mode<synchronous>, transform_indices = @transform_3, window_bounds = array<i64: 1, 128>}, {transform_indices = @transform_4, window_bounds = array<i64: 2, 64, 128>}]} {
    %c0_i32 = arith.constant 0 : i32
    %0 = arith.cmpi eq, %arg1, %c0_i32 : i32
    %1 = arith.extui %0 : i1 to i32
    %c0_i32_0 = arith.constant 0 : i32
    %2 = arith.cmpi ne, %1, %c0_i32_0 : i32
    scf.if %2 {
      %cst_17 = arith.constant 0.000000e+00 : f32
      %17 = vector.broadcast %cst_17 : f32 to vector<2x64x128xf32>
      %c0_18 = arith.constant 0 : index
      %c0_19 = arith.constant 0 : index
      %c0_20 = arith.constant 0 : index
      %18 = vector.load %arg6[%c0_18, %c0_19, %c0_20] : memref<2x64x128xf32, #tpu.memory_space<vmem>>, vector<2x64x128xf32>
      tpu.vector_store %arg6[%c0_18, %c0_19, %c0_20], %17 {strides = array<i32>} : memref<2x64x128xf32, #tpu.memory_space<vmem>>, vector<2x64x128xf32>,
    } else {
    }
    %c0 = arith.constant 0 : index
    %c0_1 = arith.constant 0 : index
    %c0_2 = arith.constant 0 : index
    %3 = vector.load %arg3[%c0, %c0_1, %c0_2] : memref<2x128x16xf32, #tpu.memory_space<vmem>>, vector<2x128x16xf32>
    %4 = vector.shape_cast %3 : vector<2x128x16xf32> to vector<256x16xf32>
    %c0_3 = arith.constant 0 : index
    %c0_4 = arith.constant 0 : index
    %5 = vector.load %arg4[%c0_3, %c0_4] : memref<16x128xf32, #tpu.memory_space<vmem>>, vector<16x128xf32>
    %cst = arith.constant dense<0.000000e+00> : vector<256x128xf32>
    %6 = tpu.matmul %4, %5, %cst {dimension_numbers = #tpu.dot_dimension_numbers<[1], [0], [0], [1], [0, 0, 1, 1], [], []>} : vector<256x16xf32>, vector<16x128xf32>, vector<256x128xf32> -> vector<256x128xf32>
    %7 = vector.shape_cast %6 : vector<256x128xf32> to vector<2x128x128xf32>
    %8 = arith.truncf %7 : vector<2x128x128xf32> to vector<2x128x128xbf16>
    %c0_5 = arith.constant 0 : index
    %c0_6 = arith.constant 0 : index
    %c0_7 = arith.constant 0 : index
    %9 = vector.load %arg6[%c0_5, %c0_6, %c0_7] : memref<2x64x128xf32, #tpu.memory_space<vmem>>, vector<2x64x128xf32>
    %c0_8 = arith.constant 0 : index
    %c0_9 = arith.constant 0 : index
    %c0_10 = arith.constant 0 : index
    %10 = vector.load %arg2[%c0_8, %c0_9, %c0_10] : memref<2x64x128xbf16, #tpu.memory_space<vmem>>, vector<2x64x128xbf16>
    "tpu.trace_start"() <{level = 10 : i32, message = "bik,bko->bio"}> : () -> ()
    %cst_11 = arith.constant dense<0.000000e+00> : vector<2x64x128xf32>
    %11 = tpu.matmul %10, %8, %cst_11 {dimension_numbers = #tpu.dot_dimension_numbers<[2], [1], [1], [2], [0, 0, 0, 1, 1, 2], [0], [0]>} : vector<2x64x128xbf16>, vector<2x128x128xbf16>, vector<2x64x128xf32> -> vector<2x64x128xf32>
    "tpu.trace_stop"() : () -> ()
    %12 = arith.addf %9, %11 : vector<2x64x128xf32>
    %c0_12 = arith.constant 0 : index
    %c0_13 = arith.constant 0 : index
    %c0_14 = arith.constant 0 : index
    %13 = vector.load %arg6[%c0_12, %c0_13, %c0_14] : memref<2x64x128xf32, #tpu.memory_space<vmem>>, vector<2x64x128xf32>
    tpu.vector_store %arg6[%c0_12, %c0_13, %c0_14], %12 {strides = array<i32>} : memref<2x64x128xf32, #tpu.memory_space<vmem>>, vector<2x64x128xf32>,
    %c0_i32_15 = arith.constant 0 : i32
    %14 = arith.cmpi eq, %arg1, %c0_i32_15 : i32
    %15 = arith.extui %14 : i1 to i32
    %c0_i32_16 = arith.constant 0 : i32
    %16 = arith.cmpi ne, %15, %c0_i32_16 : i32
    scf.if %16 {
      %c0_17 = arith.constant 0 : index
      %c0_18 = arith.constant 0 : index
      %c0_19 = arith.constant 0 : index
      %17 = vector.load %arg6[%c0_17, %c0_18, %c0_19] : memref<2x64x128xf32, #tpu.memory_space<vmem>>, vector<2x64x128xf32>
      %c0_20 = arith.constant 0 : index
      %c0_21 = arith.constant 0 : index
      %18 = vector.load %arg5[%c0_20, %c0_21] : memref<1x128xf32, #tpu.memory_space<vmem>>, vector<1x128xf32>
      %19 = vector.shape_cast %18 : vector<1x128xf32> to vector<1x1x128xf32>
      %20 = vector.broadcast %19 : vector<1x1x128xf32> to vector<2x64x128xf32>
      %21 = arith.addf %17, %20 : vector<2x64x128xf32>
      %22 = arith.mulf %21, %21 : vector<2x64x128xf32>
      %cst_22 = arith.constant dense<0.000000e+00> : vector<2x64xf32>
      %23 = vector.multi_reduction <add>, %22, %cst_22 [2] : vector<2x64x128xf32> to vector<2x64xf32>
      %24 = vector.shape_cast %23 : vector<2x64xf32> to vector<2x64x1xf32>
      %25 = math.rsqrt %24 : vector<2x64x1xf32>
      %cst_23 = arith.constant 9.99999995E+11 : f32
      %26 = vector.broadcast %cst_23 : f32 to vector<2x64x1xf32>
      %27 = arith.minimumf %25, %26 : vector<2x64x1xf32>
      %28 = vector.broadcast %27 : vector<2x64x1xf32> to vector<2x64x128xf32>
      %29 = arith.mulf %21, %28 : vector<2x64x128xf32>
      %cst_24 = arith.constant 0.000000e+00 : f32
      %30 = vector.broadcast %cst_24 : f32 to vector<2x64x128xf32>
      %31 = arith.maximumf %29, %30 : vector<2x64x128xf32>
      %cst_25 = arith.constant dense<0.000000e+00> : vector<2x64xf32>
      %32 = vector.multi_reduction <add>, %31, %cst_25 [2] : vector<2x64x128xf32> to vector<2x64xf32>
      %33 = vector.shape_cast %32 : vector<2x64xf32> to vector<2x64x1xf32>
      %cst_26 = arith.constant dense<0.000000e+00> : vector<64x1xf32>
      %34 = vector.multi_reduction <add>, %33, %cst_26 [0] : vector<2x64x1xf32> to vector<64x1xf32>
      %35 = vector.shape_cast %34 : vector<64x1xf32> to vector<1x64x1xf32>
      %36 = arith.mulf %31, %31 : vector<2x64x128xf32>
      %cst_27 = arith.constant dense<0.000000e+00> : vector<2x64xf32>
      %37 = vector.multi_reduction <add>, %36, %cst_27 [2] : vector<2x64x128xf32> to vector<2x64xf32>
      %38 = vector.shape_cast %37 : vector<2x64xf32> to vector<2x64x1xf32>
      %cst_28 = arith.constant dense<0.000000e+00> : vector<64x1xf32>
      %39 = vector.multi_reduction <add>, %38, %cst_28 [0] : vector<2x64x1xf32> to vector<64x1xf32>
      %40 = vector.shape_cast %39 : vector<64x1xf32> to vector<1x64x1xf32>
      %cst_29 = arith.constant 1.250000e-01 : f32
      %41 = vector.broadcast %cst_29 : f32 to vector<1x64x1xf32>
      %42 = arith.mulf %35, %41 : vector<1x64x1xf32>
      %cst_30 = arith.constant 1.250000e-01 : f32
      %43 = vector.broadcast %cst_30 : f32 to vector<1x64x1xf32>
      %44 = arith.mulf %40, %43 : vector<1x64x1xf32>
      %45 = arith.mulf %42, %42 : vector<1x64x1xf32>
      %46 = arith.subf %44, %45 : vector<1x64x1xf32>
      %47 = vector.broadcast %42 : vector<1x64x1xf32> to vector<2x64x128xf32>
      %48 = arith.subf %31, %47 : vector<2x64x128xf32>
      %cst_31 = arith.constant 9.99999974E-6 : f32
      %49 = vector.broadcast %cst_31 : f32 to vector<1x64x1xf32>
      %50 = arith.addf %46, %49 : vector<1x64x1xf32>
      %51 = math.rsqrt %50 : vector<1x64x1xf32>
      %52 = vector.broadcast %51 : vector<1x64x1xf32> to vector<2x64x128xf32>
      %53 = arith.mulf %48, %52 : vector<2x64x128xf32>
      %54 = tpu.iota {dimensions = array<i32: 2>} : vector<2x64x128xi32>
      %c4_i32 = arith.constant 4 : i32
      %55 = vector.broadcast %c4_i32 : i32 to vector<2x64x128xi32>
      %56 = arith.cmpi slt, %54, %55 : vector<2x64x128xi32>
      %cst_32 = arith.constant -1.000000e+30 : f32
      %57 = vector.broadcast %cst_32 : f32 to vector<2x64x128xf32>
      %58 = arith.select %56, %53, %57 : vector<2x64x128xi1>, vector<2x64x128xf32>
      %cst_33 = arith.constant dense<0xFF800000> : vector<2x64xf32>
      %59 = vector.multi_reduction <maximumf>, %58, %cst_33 [2] : vector<2x64x128xf32> to vector<2x64xf32>
      %60 = vector.shape_cast %59 : vector<2x64xf32> to vector<2x64x1xf32>
      %61 = vector.broadcast %60 : vector<2x64x1xf32> to vector<2x64x128xf32>
      %62 = arith.subf %58, %61 : vector<2x64x128xf32>
      %63 = math.exp %62 : vector<2x64x128xf32>
      %cst_34 = arith.constant dense<0.000000e+00> : vector<2x64xf32>
      %64 = vector.multi_reduction <add>, %63, %cst_34 [2] : vector<2x64x128xf32> to vector<2x64xf32>
      %65 = vector.shape_cast %64 : vector<2x64xf32> to vector<2x64x1xf32>
      %66 = vector.broadcast %65 : vector<2x64x1xf32> to vector<2x64x128xf32>
      %67 = arith.divf %63, %66 : vector<2x64x128xf32>
      %c0_35 = arith.constant 0 : index
      %c0_36 = arith.constant 0 : index
      %c0_37 = arith.constant 0 : index
      %68 = vector.load %arg6[%c0_35, %c0_36, %c0_37] : memref<2x64x128xf32, #tpu.memory_space<vmem>>, vector<2x64x128xf32>
      tpu.vector_store %arg6[%c0_35, %c0_36, %c0_37], %67 {strides = array<i32>} : memref<2x64x128xf32, #tpu.memory_space<vmem>>, vector<2x64x128xf32>,
    } else {
    }
    return
  }
  func.func @transform_0(%arg0: i32, %arg1: i32) -> (i32, i32, i32) {
    %c0_i32 = arith.constant 0 : i32
    %c0_i32_0 = arith.constant 0 : i32
    return %c0_i32, %arg0, %arg1 : i32, i32, i32
  }
  func.func @transform_1(%arg0: i32, %arg1: i32) -> (i32, i32, i32) {
    %c0_i32 = arith.constant 0 : i32
    %c0_i32_0 = arith.constant 0 : i32
    %c0_i32_1 = arith.constant 0 : i32
    return %c0_i32, %arg1, %c0_i32_0 : i32, i32, i32
  }
  func.func @transform_2(%arg0: i32, %arg1: i32) -> (i32, i32) {
    %c0_i32 = arith.constant 0 : i32
    %c0_i32_0 = arith.constant 0 : i32
    %c0_i32_1 = arith.constant 0 : i32
    return %c0_i32, %c0_i32_0 : i32, i32
  }
  func.func @transform_3(%arg0: i32, %arg1: i32) -> (i32, i32) {
    %c0_i32 = arith.constant 0 : i32
    %c0_i32_0 = arith.constant 0 : i32
    %c0_i32_1 = arith.constant 0 : i32
    return %c0_i32, %c0_i32_0 : i32, i32
  }
  func.func @transform_4(%arg0: i32, %arg1: i32) -> (i32, i32, i32) {
    %c0_i32 = arith.constant 0 : i32
    %c0_i32_0 = arith.constant 0 : i32
    %c0_i32_1 = arith.constant 0 : i32
    return %c0_i32, %arg0, %c0_i32_0 : i32, i32, i32
  }
}

</mosaic_0001>

<bundles_post_ra>
// kernel: tpu_custom_call.1
= control target key start
LH: loop header
LB: loop body
LE: loop exit
PB: predicated region body
PF: predicated region fallthrough
CT: control target
= control target key end

     0   :  { %9 = vsyncpa [#allocation4], 0  ;;  %s2793_s0 = inlined_call_operand.vmem [shape: bf16[2,128,128], index: 0, kind: input, shape index: {}]   ;;  %s2794_s1 = inlined_call_operand.vmem [shape: f32[2,128,16], index: 1, kind: input, shape index: {}]   ;;  %s2795_s2 = inlined_call_operand.vmem [shape: f32[16,128], index: 2, kind: input, shape index: {}]   ;;  %s2796_s3 = inlined_call_operand.vmem [shape: f32[1,128], index: 3, kind: input, shape index: {}]   ;;  %s2797_s4 = inlined_call_operand.hbm [shape: f32[2,128,128], index: 4, kind: output, shape index: {}]  }
   0x1   :  { %11 = vsyncpa [#allocation4 + $0x1], 0  ;;  %s2117_s15 = smov 0   ;;  %s2119_s16 = smov 0  }
   0x2   :  { %s2121_s17 = smov 0   ;;  %s2123_s18 = smov 0  }
   0x3   :  { %s2125_s19 = smov 0   ;;  %s2127_s20 = smov 0  }
   0x4 LB: > { %s1613_s21 = sadd.s32 4294967295, %s2084_s20   ;;  %s1614_s22 = sadd.s32 4294967294, %s2084_s20   ;;  %s2084_s20 = sphi %s2127_s20, %s17_s20   ;;  %s2080_s19 = sphi %s2125_s19, %s2804_s19   ;;  %s2076_s18 = sphi %s2123_s18, %s2803_s18   ;;  %s2072_s17 = sphi %s2121_s17, %s2802_s17   ;;  %s2068_s16 = sphi %s2119_s16, %s2801_s16   ;;  %s2064_s15 = sphi %s2117_s15, %s2800_s15  }
   0x5   : > { %s29_s23 = sadd.s32 1, %s2080_s19  ;;  %s38_s24 = sadd.s32 1, %s2072_s17 }
   0x6   : > { %p31_p0 = scmp.ge.s32.totalorder %s29_s23, 2  ;;  %p45_p1 = scmp.ne.s32.totalorder %s2072_s17, %s2068_s16 }
   0x7   : > { %p46_p2 = scmp.eq.s32.totalorder %s2084_s20, 0  ;;  %p143_p3 = scmp.eq.s32.totalorder %s1613_s21, 1 }
   0x8   : > { %s2806_s23 = smov (%p31_p0, %s29_s23), 0  ;;  %p148_p6 = scmp.ne.s32.totalorder %s2068_s16, %s2064_s15 }
   0x9   : > { %p47_p4 = por %p46_p2, %p45_p1  ;;  %p2156_p5 = por %p143_p3, %p45_p1 }
   0xa   : > { %s33_s26 = ssub.s32 %s2080_s19, %s2806_s23  ;;  %p149_p8 = scmp.eq.s32.totalorder %s1614_s22, 1 }
   0xb   : > { %p36_p7 = scmp.eq.s32.totalorder %s33_s26, 0  ;;  %p1617_p10 = scmp.ge.s32.totalorder %s2084_s20, 2 }
   0xc   : > { %p2167_p9 = por %p149_p8, %p148_p6 }
   0xd   : > { %s2165_s27 = scalar_select %p36_p7, %s2072_s17, %s38_s24  }
   0xe   : > { %180 = sbr.rel (%p1617_p10) target bundleno = 27 (0x1b), region = 28 }
  0x13   : > { %183 = sbr.rel (!%p47_p4) target bundleno = 27 (0x1b), region = 32  ;;  %s185_s29 = sand.u32 (%p47_p4), 1, %s2072_s17  }
  0x14   : > { %s1670_s30 = sshll.u32 (%p47_p4), %s2080_s19, 5  ;;  %s1618_s5 = sshll.u32 (%p47_p4), %s185_s29, 6 }
  0x15   : > { %s191_s8 = scalar_lea.vmem (%p47_p4), %s2793_s0, %s1670_s30  ;;  %s187_s9 = scalar_lea.vmem (%p47_p4), [#allocation2], %s1618_s5 }
  0x16   : > { %v208_v0 = vld [vmem:[%s191_s8] sm:$0xff] (%p47_p4)   ;;  %v212_v1 = vld [vmem:[%s191_s8 + $0x8] sm:$0xff] (%p47_p4)   ;;  %v216_v2 = vld [vmem:[%s191_s8 + $0x10] sm:$0xff] (%p47_p4)  }
  0x17   : > { %209 = vst [vmem:[%s187_s9] sm:$0xff] (%p47_p4), %v208_v0   ;;  %213 = vst [vmem:[%s187_s9 + $0x8] sm:$0xff] (%p47_p4), %v212_v1   ;;  %v220_v3 = vld [vmem:[%s191_s8 + $0x18] sm:$0xff] (%p47_p4)   ;;  %v224_v4 = vld [vmem:[%s191_s8 + $0x40] sm:$0xff] (%p47_p4)  }
  0x18   : > { %217 = vst [vmem:[%s187_s9 + $0x10] sm:$0xff] %v216_v2   ;;  %v228_v5 = vld [vmem:[%s191_s8 + $0x48] sm:$0xff]   ;;  %221 = vst [vmem:[%s187_s9 + $0x18] sm:$0xff] %v220_v3   ;;  %v232_v6 = vld [vmem:[%s191_s8 + $0x50] sm:$0xff]  }
  0x19   : > { %225 = vst [vmem:[%s187_s9 + $0x20] sm:$0xff] %v224_v4   ;;  %229 = vst [vmem:[%s187_s9 + $0x28] sm:$0xff] %v228_v5   ;;  %v236_v7 = vld [vmem:[%s191_s8 + $0x58] sm:$0xff]  }
  0x1a   : > { %233 = vst [vmem:[%s187_s9 + $0x30] sm:$0xff] %v232_v6   ;;  %237 = vst [vmem:[%s187_s9 + $0x38] sm:$0xff] %v236_v7  }
  0x1b PF: > { %p1621_p11 = scmp.ge.s32.totalorder %s2084_s20, 1  ;;  %p294_p12 = scmp.lt.s32.totalorder %s2084_s20, 3 }
  0x1d   : > { %p295_p13 = pnand %p1621_p11, %p294_p12 }
  0x1e   : > { %s2316_s14 = sand.u32 (!%p295_p13), 1, %s2068_s16  }
  0x1f   : > { %298 = sbr.rel (%p295_p13) target bundleno = 1233 (0x4d1), region = 73  ;;  %s1622_s21 = sshll.u32 (!%p295_p13), %s2316_s14, 6 }
  0x20   : > { %s2319_s22 = scalar_lea.vmem (!%p295_p13), [#allocation2], %s1622_s21  ;;  %s1623_s29 = sshll.u32 (!%p295_p13), %s2316_s14, 7 }
  0x21   : > { %s2717_s30 = scalar_lea.vmem (!%p295_p13), [#allocation3], %s1623_s29  ;;  %s1484_s5 = scalar_lea.sflag (!%p295_p13), [#allocation4], %s2316_s14 }
  0x24   : > { %v393_v8 = vld [vmem:[%s2795_s2 + $0x8] sm:$0xff]  ;;  %v392_v9 = vld [vmem:[%s2795_s2] sm:$0xff]  ;;  %vm394_vm0 = vcmask 130048   ;;  %v362_v12 = vld [vmem:[%s2794_s1 + $0x10] sm:$0xff] }
  0x25   : > { %v360_v10 = vld [vmem:[%s2794_s1] sm:$0xff]  ;;  %1730 = vmatprep.subr.mxu0 %v393_v8  ;;  %v361_v11 = vld [vmem:[%s2794_s1 + $0x8] sm:$0xff]  ;;  %v363_v13 = vld [vmem:[%s2794_s1 + $0x18] sm:$0xff] }
  0x26   : > { %1734 = vmatprep.mubr.msk.f32.mxu0 %vm394_vm0, %v360_v10  ;;  %1731 = vmatpush3.msra.mxu0 %v393_v8  ;;  %v364_v14 = vld [vmem:[%s2794_s1 + $0x20] sm:$0xff]  ;;  %v365_v15 = vld [vmem:[%s2794_s1 + $0x28] sm:$0xff]  ;;  %v366_v16 = vld [vmem:[%s2794_s1 + $0x30] sm:$0xff] }
  0x27   : > { %1732 = vmatprep.subr.mxu0 %v392_v9  ;;  %v367_v17 = vld [vmem:[%s2794_s1 + $0x38] sm:$0xff]  ;;  %v368_v18 = vld [vmem:[%s2794_s1 + $0x40] sm:$0xff]  ;;  %v369_v19 = vld [vmem:[%s2794_s1 + $0x48] sm:$0xff] }
  0x28   : > { %1733 = vmatpush3.msra.mxu0 %v392_v9  ;;  %v370_v20 = vld [vmem:[%s2794_s1 + $0x50] sm:$0xff]  ;;  %v371_v21 = vld [vmem:[%s2794_s1 + $0x58] sm:$0xff]  ;;  %v372_v22 = vld [vmem:[%s2794_s1 + $0x60] sm:$0xff] }
  0x29   : > { %1735 = vmatmul.mubr.msk.f32.vlgmr.msra.gmra.mxu0 %vm394_vm0, %v361_v11  ;;  %v373_v23 = vld [vmem:[%s2794_s1 + $0x68] sm:$0xff]  ;;  %v374_v24 = vld [vmem:[%s2794_s1 + $0x70] sm:$0xff]  ;;  %v375_v25 = vld [vmem:[%s2794_s1 + $0x78] sm:$0xff] }
  0x2a   : > { %1737 = vmatprep.mubr.msk.f32.mxu0 %vm394_vm0, %v362_v12  ;;  %v376_v26 = vld [vmem:[%s2794_s1 + $0x80] sm:$0xff]  ;;  %v377_v27 = vld [vmem:[%s2794_s1 + $0x88] sm:$0xff]  ;;  %v378_v28 = vld [vmem:[%s2794_s1 + $0x90] sm:$0xff] }
  0x2b   : > { %v379_v29 = vld [vmem:[%s2794_s1 + $0x98] sm:$0xff]  ;;  %v380_v30 = vld [vmem:[%s2794_s1 + $0xa0] sm:$0xff]  ;;  %v381_v31 = vld [vmem:[%s2794_s1 + $0xa8] sm:$0xff] }
  0x2c   : > { %v382_v32 = vld [vmem:[%s2794_s1 + $0xb0] sm:$0xff]  ;;  %v383_v33 = vld [vmem:[%s2794_s1 + $0xb8] sm:$0xff]  ;;  %v384_v34 = vld [vmem:[%s2794_s1 + $0xc0] sm:$0xff] }
  0x2d   : > { %1738 = vmatmul.mubr.msk.f32.gmra.mxu0 %vm394_vm0, %v363_v13  ;;  %v385_v35 = vld [vmem:[%s2794_s1 + $0xc8] sm:$0xff]  ;;  %v386_v36 = vld [vmem:[%s2794_s1 + $0xd0] sm:$0xff]  ;;  %v387_v37 = vld [vmem:[%s2794_s1 + $0xd8] sm:$0xff] }
  0x2e   : > { %1740 = vmatprep.mubr.msk.f32.mxu0 %vm394_vm0, %v364_v14  ;;  %v388_v38 = vld [vmem:[%s2794_s1 + $0xe0] sm:$0xff]  ;;  %v389_v39 = vld [vmem:[%s2794_s1 + $0xe8] sm:$0xff]  ;;  %v390_v40 = vld [vmem:[%s2794_s1 + $0xf0] sm:$0xff] }
  0x2f   : > { %v391_v41 = vld [vmem:[%s2794_s1 + $0xf8] sm:$0xff]  ;;  %v1914_v42 = vld [vmem:[%s2319_s22] sm:$0xff]  }
  0x30   : > { %1798 = vmatprep.mubr.bf16.mxu1 %v1914_v42  ;;  %v1918_v43 = vld [vmem:[%s2319_s22 + $0x20] sm:$0xff]  }
  0x31   : > { %1741 = vmatmul.mubr.msk.f32.gmra.mxu0 %vm394_vm0, %v365_v15 }
  0x32   : > { %1743 = vmatprep.mubr.msk.f32.mxu0 %vm394_vm0, %v366_v16 }
  0x35   : > { %1744 = vmatmul.mubr.msk.f32.gmra.mxu0 %vm394_vm0, %v367_v17 }
  0x36   : > { %1746 = vmatprep.mubr.msk.f32.mxu0 %vm394_vm0, %v368_v18 }
  0x39   : > { %1747 = vmatmul.mubr.msk.f32.gmra.mxu0 %vm394_vm0, %v369_v19  ;;  %v1915_v19 = vld [vmem:[%s2319_s22 + $0x8] sm:$0xff]  }
  0x3a   : > { %1749 = vmatprep.mubr.msk.f32.mxu0 %vm394_vm0, %v370_v20 }
  0x3d   : > { %1750 = vmatmul.mubr.msk.f32.gmra.mxu0 %vm394_vm0, %v371_v21 }
  0x3e   : > { %1752 = vmatprep.mubr.msk.f32.mxu0 %vm394_vm0, %v372_v22  ;;  %v1916_v22 = vld [vmem:[%s2319_s22 + $0x10] sm:$0xff]  }
  0x41   : > { %1753 = vmatmul.mubr.msk.f32.gmra.mxu0 %vm394_vm0, %v373_v23 }
  0x42   : > { %1755 = vmatprep.mubr.msk.f32.mxu0 %vm394_vm0, %v374_v24 }
  0x45   : > { %1756 = vmatmul.mubr.msk.f32.gmra.mxu0 %vm394_vm0, %v375_v25  ;;  %v1917_v25 = vld [vmem:[%s2319_s22 + $0x18] sm:$0xff]  }
  0x46   : > { %1758 = vmatprep.mubr.msk.f32.mxu0 %vm394_vm0, %v376_v26  ;;  %v1920_v26 = vld [vmem:[%s2319_s22 + $0x30] sm:$0xff]  }
  0x49   : > { %1759 = vmatmul.mubr.msk.f32.gmra.mxu0 %vm394_vm0, %v377_v27 }
  0x4a   : > { %1761 = vmatprep.mubr.msk.f32.mxu0 %vm394_vm0, %v378_v28 }
  0x4d   : > { %1762 = vmatmul.mubr.msk.f32.gmra.mxu0 %vm394_vm0, %v379_v29 }
  0x4e   : > { %1764 = vmatprep.mubr.msk.f32.mxu0 %vm394_vm0, %v380_v30 }
  0x51   : > { %1765 = vmatmul.mubr.msk.f32.gmra.mxu0 %vm394_vm0, %v381_v31 }
  0x52   : > { %1767 = vmatprep.mubr.msk.f32.mxu0 %vm394_vm0, %v382_v32  ;;  %v1919_v32 = vld [vmem:[%s2319_s22 + $0x28] sm:$0xff]  }
  0x55   : > { %1768 = vmatmul.mubr.msk.f32.gmra.mxu0 %vm394_vm0, %v383_v33  ;;  %v1921_v33 = vld [vmem:[%s2319_s22 + $0x38] sm:$0xff]  }
  0x56   : > { %1770 = vmatprep.mubr.msk.f32.mxu0 %vm394_vm0, %v384_v34 }
  0x59   : > { %1771 = vmatmul.mubr.msk.f32.gmra.mxu0 %vm394_vm0, %v385_v35  ;;  %v1664_v35 = vld [vmem:[%s2796_s3] ss:$0 sm:$0xff] }
  0x5a   : > { %1773 = vmatprep.mubr.msk.f32.mxu0 %vm394_vm0, %v386_v36 }
  0x5d   : > { %1774 = vmatmul.mubr.msk.f32.gmra.mxu0 %vm394_vm0, %v387_v37 }
  0x5e   : > { %1776 = vmatprep.mubr.msk.f32.mxu0 %vm394_vm0, %v388_v38 }
  0x61   : > { %1777 = vmatmul.mubr.msk.f32.gmra.mxu0 %vm394_vm0, %v389_v39 }
  0x62   : > { %1779 = vmatprep.mubr.msk.f32.mxu0 %vm394_vm0, %v390_v40 }
  0x65   : > { %1780 = vmatmul.mubr.msk.f32.gmra.mxu0 %vm394_vm0, %v391_v41 }
  0x66   : > { %1822 = vmatprep.mubr.bf16.mxu0 %v1918_v43 }
  0xe9   : > { %v1736_v44 = vpop.f32.mrf.mxu0 }
  0xeb   : > { %v557_v45 = vpop.f32.mrf.mxu0 }
  0xec   : > { %v716_v16 = vpack.c.bf16 %v1736_v44, %v557_v45 }
  0xed   : > { %v1739_v46 = vpop.f32.mrf.mxu0 }
  0xef   : > { %v567_v47 = vpop.f32.mrf.mxu0 }
  0xf0   : > { %v717_v13 = vpack.c.bf16 %v1739_v46, %v567_v47 }
  0xf1   : > { %v1742_v48 = vpop.f32.mrf.mxu0 }
  0xf3   : > { %v577_v49 = vpop.f32.mrf.mxu0 }
  0xf4   : > { %v718_v10 = vpack.c.bf16 %v1742_v48, %v577_v49 }
  0xf5   : > { %v1745_v50 = vpop.f32.mrf.mxu0 }
  0xf7   : > { %v587_v51 = vpop.f32.mrf.mxu0 }
  0xf8   : > { %v719_v7 = vpack.c.bf16 %v1745_v50, %v587_v51 }
  0xf9   : > { %v1748_v52 = vpop.f32.mrf.mxu0 }
  0xfb   : > { %v597_v53 = vpop.f32.mrf.mxu0 }
  0xfc   : > { %v720_v4 = vpack.c.bf16 %v1748_v52, %v597_v53 }
  0xfd   : > { %v1751_v54 = vpop.f32.mrf.mxu0 }
  0xff   : > { %v607_v55 = vpop.f32.mrf.mxu0 }
 0x100   : > { %v721_v1 = vpack.c.bf16 %v1751_v54, %v607_v55 }
 0x101   : > { %v1754_v56 = vpop.f32.mrf.mxu0 }
 0x103   : > { %v617_v57 = vpop.f32.mrf.mxu0 }
 0x104   : > { %v722_v62 = vpack.c.bf16 %v1754_v56, %v617_v57 }
 0x105   : > { %v1757_v58 = vpop.f32.mrf.mxu0 }
 0x107   : > { %v627_v59 = vpop.f32.mrf.mxu0 }
 0x108   : > { %v723_v60 = vpack.c.bf16 %v1757_v58, %v627_v59 }
 0x109   : > { %v2323_v61 = vpop.f32.mrf.mxu0 }
 0x10a   : > { %1782 = vmatprep.subr.bf16.mxu1 %v723_v60 }
 0x10b   : > { %v2325_v63 = vpop.f32.mrf.mxu0  ;;  %1783 = vmatpush3.bf16.msra.mxu1 %v723_v60 }
 0x10c   : > { %1784 = vmatprep.subr.bf16.mxu1 %v722_v62  ;;  %v724_v31 = vpack.c.bf16 %v2323_v61, %v2325_v63 }
 0x10d   : > { %v2327_v0 = vpop.f32.mrf.mxu0 }
 0x10f   : > { %v2329_v2 = vpop.f32.mrf.mxu0  ;;  %1785 = vmatpush3.bf16.msra.mxu1 %v722_v62 }
 0x110   : > { %1786 = vmatprep.subr.bf16.mxu1 %v721_v1  ;;  %v725_v30 = vpack.c.bf16 %v2327_v0, %v2329_v2 }
 0x111   : > { %v1766_v3 = vpop.f32.mrf.mxu0 }
 0x113   : > { %v657_v5 = vpop.f32.mrf.mxu0  ;;  %1787 = vmatpush3.bf16.msra.mxu1 %v721_v1 }
 0x114   : > { %1788 = vmatprep.subr.bf16.mxu1 %v720_v4  ;;  %v726_v29 = vpack.c.bf16 %v1766_v3, %v657_v5 }
 0x115   : > { %v1769_v6 = vpop.f32.mrf.mxu0 }
 0x117   : > { %v667_v8 = vpop.f32.mrf.mxu0  ;;  %1789 = vmatpush3.bf16.msra.mxu1 %v720_v4 }
 0x118   : > { %1790 = vmatprep.subr.bf16.mxu1 %v719_v7  ;;  %v727_v28 = vpack.c.bf16 %v1769_v6, %v667_v8 }
 0x119   : > { %v1772_v9 = vpop.f32.mrf.mxu0 }
 0x11b   : > { %v677_v11 = vpop.f32.mrf.mxu0  ;;  %1791 = vmatpush3.bf16.msra.mxu1 %v719_v7 }
 0x11c   : > { %1792 = vmatprep.subr.bf16.mxu1 %v718_v10  ;;  %v728_v27 = vpack.c.bf16 %v1772_v9, %v677_v11 }
 0x11d   : > { %v1775_v12 = vpop.f32.mrf.mxu0 }
 0x11f   : > { %v687_v14 = vpop.f32.mrf.mxu0  ;;  %1793 = vmatpush3.bf16.msra.mxu1 %v718_v10 }
 0x120   : > { %1794 = vmatprep.subr.bf16.mxu1 %v717_v13  ;;  %v729_v24 = vpack.c.bf16 %v1775_v12, %v687_v14 }
 0x121   : > { %v1778_v15 = vpop.f32.mrf.mxu0 }
 0x123   : > { %v697_v17 = vpop.f32.mrf.mxu0  ;;  %1795 = vmatpush3.bf16.msra.mxu1 %v717_v13 }
 0x124   : > { %1796 = vmatprep.subr.bf16.mxu1 %v716_v16  ;;  %v730_v23 = vpack.c.bf16 %v1778_v15, %v697_v17 }
 0x125   : > { %v1781_v18 = vpop.f32.mrf.mxu0 }
 0x127   : > { %v707_v20 = vpop.f32.mrf.mxu0  ;;  %1797 = vmatpush3.bf16.msra.mxu1 %v716_v16 }
 0x128   : > { %v731_v21 = vpack.c.bf16 %v1781_v18, %v707_v20 }
 0x12a   : > { %1799 = vmatmul.mubr.bf16.vlgmr.msra.gmra.mxu1 %v1915_v19  ;;  %1806 = vmatprep.subr.bf16.mxu0 %v731_v21 }
 0x12b   : > { %1830 = vmatprep.subr.bf16.mxu1 %v731_v21  ;;  %1807 = vmatpush3.bf16.msra.mxu0 %v731_v21 }
 0x12c   : > { %1838 = vmatpush3.bf16.msra.mxu1 %v731_v21  ;;  %1808 = vmatprep.subr.bf16.mxu0 %v730_v23 }
 0x12d   : > { %1831 = vmatprep.subr.bf16.mxu1 %v730_v23  ;;  %1802 = vmatprep.mubr.bf16.mxu1 %v1916_v22 }
 0x12f   : > { %1809 = vmatpush3.bf16.msra.mxu0 %v730_v23 }
 0x130   : > { %1839 = vmatpush3.bf16.msra.mxu1 %v730_v23  ;;  %1810 = vmatprep.subr.bf16.mxu0 %v729_v24 }
 0x131   : > { %1832 = vmatprep.subr.bf16.mxu1 %v729_v24 }
 0x132   : > { %1803 = vmatmul.mubr.bf16.gmra.mxu1 %v1917_v25 }
 0x133   : > { %1811 = vmatpush3.bf16.msra.mxu0 %v729_v24  ;;  %1826 = vmatprep.mubr.bf16.mxu1 %v1920_v26 }
 0x134   : > { %1840 = vmatpush3.bf16.msra.mxu1 %v729_v24  ;;  %1812 = vmatprep.subr.bf16.mxu0 %v728_v27 }
 0x135   : > { %1833 = vmatprep.subr.bf16.mxu1 %v728_v27 }
 0x137   : > { %1813 = vmatpush3.bf16.msra.mxu0 %v728_v27 }
 0x138   : > { %1841 = vmatpush3.bf16.msra.mxu1 %v728_v27  ;;  %1814 = vmatprep.subr.bf16.mxu0 %v727_v28 }
 0x139   : > { %1834 = vmatprep.subr.bf16.mxu1 %v727_v28 }
 0x13b   : > { %1815 = vmatpush3.bf16.msra.mxu0 %v727_v28 }
 0x13c   : > { %1842 = vmatpush3.bf16.msra.mxu1 %v727_v28  ;;  %1816 = vmatprep.subr.bf16.mxu0 %v726_v29 }
 0x13d   : > { %1835 = vmatprep.subr.bf16.mxu1 %v726_v29 }
 0x13f   : > { %1817 = vmatpush3.bf16.msra.mxu0 %v726_v29 }
 0x140   : > { %1843 = vmatpush3.bf16.msra.mxu1 %v726_v29  ;;  %1818 = vmatprep.subr.bf16.mxu0 %v725_v30 }
 0x141   : > { %1836 = vmatprep.subr.bf16.mxu1 %v725_v30 }
 0x143   : > { %1819 = vmatpush3.bf16.msra.mxu0 %v725_v30 }
 0x144   : > { %1844 = vmatpush3.bf16.msra.mxu1 %v725_v30  ;;  %1820 = vmatprep.subr.bf16.mxu0 %v724_v31 }
 0x145   : > { %1837 = vmatprep.subr.bf16.mxu1 %v724_v31 }
 0x147   : > { %1821 = vmatpush3.bf16.msra.mxu0 %v724_v31 }
 0x148   : > { %1845 = vmatpush3.bf16.msra.mxu1 %v724_v31 }
 0x14a   : > { %1823 = vmatmul.mubr.bf16.vlgmr.msra.gmra.mxu0 %v1919_v32 }
 0x14b   : > { %1827 = vmatmul.mubr.bf16.vlgmr.msra.gmra.mxu1 %v1921_v33 }
 0x1ea   : > { %v1800_v34 = vpop.f32.mrf.mxu1 }
 0x1eb   : > { %v2344_v37 = vadd.f32 %v1800_v34, %v1664_v35 }
 0x1ec   : > { %v822_v36 = vpop.f32.mrf.mxu1 }
 0x1ed   : > { %v1018_v39 = vmul.f32 %v2344_v37, %v2344_v37  ;;  %v2348_v40 = vadd.f32 %v1664_v35, %v822_v36 }
 0x1ee   : > { %v1801_v38 = vpop.f32.mrf.mxu1 }
 0x1ef   : > { %1036 = vadd.xlane.f32.xlu1 %v1018_v39  ;;  %v1016_v42 = vmul.f32 %v2348_v40, %v2348_v40  ;;  %v2352_v43 = vadd.f32 %v1801_v38, %v1664_v35 }
 0x1f0   : > { %v825_v41 = vpop.f32.mrf.mxu1 }
 0x1f1   : > { %1032 = vadd.xlane.f32.xlu0 %v1016_v42  ;;  %v1019_v45 = vmul.f32 %v2352_v43, %v2352_v43  ;;  %v2356_v46 = vadd.f32 %v1664_v35, %v825_v41 }
 0x1f2   : > { %v1804_v44 = vpop.f32.mrf.mxu1 }
 0x1f3   : > { %1038 = vadd.xlane.f32.xlu1 %v1019_v45  ;;  %v1017_v48 = vmul.f32 %v2356_v46, %v2356_v46  ;;  %v2360_v49 = vadd.f32 %v1804_v44, %v1664_v35 }
 0x1f4   : > { %v838_v47 = vpop.f32.mrf.mxu1 }
 0x1f5   : > { %1034 = vadd.xlane.f32.xlu0 %v1017_v48  ;;  %v1022_v51 = vmul.f32 %v2360_v49, %v2360_v49  ;;  %v2364_v52 = vadd.f32 %v1664_v35, %v838_v47 }
 0x1f6   : > { %v1805_v50 = vpop.f32.mrf.mxu1 }
 0x1f7   : > { %v2366_v54 = vadd.f32 %v1805_v50, %v1664_v35  ;;  %v1020_v56 = vmul.f32 %v2364_v52, %v2364_v52 }
 0x1f8   : > { %v841_v53 = vpop.f32.mrf.mxu1 }
 0x1f9   : > { %1044 = vadd.xlane.f32.xlu0 %v1022_v51  ;;  %v1023_v55 = vmul.f32 %v2366_v54, %v2366_v54  ;;  %v2372_v57 = vadd.f32 %v1664_v35, %v841_v53 }
 0x1fb   : > { %1046 = vadd.xlane.f32.xlu1 %v1023_v55  ;;  %v1021_v58 = vmul.f32 %v2372_v57, %v2372_v57 }
 0x1fd   : > { %1040 = vadd.xlane.f32.xlu0 %v1020_v56 }
 0x1ff   : > { %1042 = vadd.xlane.f32.xlu1 %v1021_v58 }
 0x20a   : > { %v1824_v59 = vpop.f32.mrf.mxu0 }
 0x20b   : > { %v1828_v60 = vpop.f32.mrf.mxu1  ;;  %v2376_v63 = vadd.f32 %v1824_v59, %v1664_v35 }
 0x20c   : > { %v911_v61 = vpop.f32.mrf.mxu0  ;;  %v2392_v11 = vadd.f32 %v1828_v60, %v1664_v35 }
 0x20d   : > { %v927_v62 = vpop.f32.mrf.mxu1  ;;  %v1026_v2 = vmul.f32 %v2376_v63, %v2376_v63  ;;  %v2380_v3 = vadd.f32 %v1664_v35, %v911_v61 }
 0x20e   : > { %v1825_v0 = vpop.f32.mrf.mxu0  ;;  %v2384_v7 = vadd.f32 %v1664_v35, %v927_v62  ;;  %v1030_v15 = vmul.f32 %v2392_v11, %v2392_v11 }
 0x20f   : > { %v1829_v1 = vpop.f32.mrf.mxu1  ;;  %1052 = vadd.xlane.f32.xlu0 %v1026_v2  ;;  %v2382_v6 = vadd.f32 %v1825_v0, %v1664_v35  ;;  %v1024_v8 = vmul.f32 %v2380_v3, %v2380_v3 }
 0x210   : > { %v914_v4 = vpop.f32.mrf.mxu0  ;;  %v1028_v13 = vmul.f32 %v2384_v7, %v2384_v7  ;;  %v2404_v17 = vadd.f32 %v1829_v1, %v1664_v35 }
 0x211   : > { %v930_v5 = vpop.f32.mrf.mxu1  ;;  %v1027_v9 = vmul.f32 %v2382_v6, %v2382_v6  ;;  %v2390_v10 = vadd.f32 %v1664_v35, %v914_v4 }
 0x212   : > { %v2398_v14 = vadd.f32 %v1664_v35, %v930_v5  ;;  %v1031_v18 = vmul.f32 %v2404_v17, %v2404_v17 }
 0x213   : > { %1048 = vadd.xlane.f32.xlu0 %v1024_v8  ;;  %1054 = vadd.xlane.f32.xlu1 %v1027_v9  ;;  %v1025_v12 = vmul.f32 %v2390_v10, %v2390_v10 }
 0x214   : > { %v1029_v16 = vmul.f32 %v2398_v14, %v2398_v14 }
 0x217   : > { %1050 = vadd.xlane.f32.xlu1 %v1025_v12  ;;  %1056 = vadd.xlane.f32.xlu0 %v1028_v13 }
 0x21b   : > { %1060 = vadd.xlane.f32.xlu0 %v1030_v15  ;;  %1058 = vadd.xlane.f32.xlu1 %v1029_v16 }
 0x21f   : > { %1062 = vadd.xlane.f32.xlu1 %v1031_v18 }
 0x278   : > { %v1037_v19 = vpop.xlane.xlu1 %1036 }
 0x279   : > { %1922 = vrsqrt.f32 %v1037_v19 }
 0x27a   : > { %v1033_v20 = vpop.xlane.xlu0 %1032 }
 0x27b   : > { %1924 = vrsqrt.f32 %v1033_v20 }
 0x27c   : > { %v1039_v21 = vpop.xlane.xlu1 %1038 }
 0x27d   : > { %1926 = vrsqrt.f32 %v1039_v21 }
 0x27e   : > { %v1035_v22 = vpop.xlane.xlu0 %1034 }
 0x27f   : > { %1928 = vrsqrt.f32 %v1035_v22 }
 0x282   : > { %v1045_v23 = vpop.xlane.xlu0 %1044 }
 0x283   : > { %1930 = vrsqrt.f32 %v1045_v23 }
 0x284   : > { %v1047_v24 = vpop.xlane.xlu1 %1046 }
 0x285   : > { %1932 = vrsqrt.f32 %v1047_v24 }
 0x286   : > { %v1923_v25 = vpop.eup %1922  ;;  %v1041_v26 = vpop.xlane.xlu0 %1040 }
 0x287   : > { %v1082_v27 = vmin.f32 %v1923_v25, 1e+12  ;;  %1934 = vrsqrt.f32 %v1041_v26 }
 0x288   : > { %v1925_v28 = vpop.eup %1924  ;;  %v1043_v29 = vpop.xlane.xlu1 %1042 }
 0x289   : > { %v1080_v30 = vmin.f32 %v1925_v28, 1e+12  ;;  %v1098_v31 = vmul.f32 %v1082_v27, %v2344_v37  ;;  %1936 = vrsqrt.f32 %v1043_v29 }
 0x28a   : > { %v1927_v32 = vpop.eup %1926 }
 0x28b   : > { %v1083_v33 = vmin.f32 %v1927_v32, 1e+12  ;;  %v2409_v34 = vmax.f32 %v1098_v31, 0.0  ;;  %v1096_v35 = vmul.f32 %v1080_v30, %v2348_v40 }
 0x28c   : > { %v1929_v36 = vpop.eup %1928 }
 0x28d   : > { %v1081_v38 = vmin.f32 %v1929_v36, 1e+12  ;;  %1132 = vadd.xlane.f32.xlu0 %v2409_v34  ;;  %v1099_v39 = vmul.f32 %v1083_v33, %v2352_v43  ;;  %v2414_v41 = vmax.f32 %v1096_v35, 0.0  ;;  %v1170_v40 = vmul.f32 %v2409_v34, %v2409_v34 }
 0x28f   : > { %v2416_v42 = vmax.f32 %v1099_v39, 0.0  ;;  %v1097_v44 = vmul.f32 %v1081_v38, %v2356_v46  ;;  %v1168_v43 = vmul.f32 %v2414_v41, %v2414_v41 }
 0x290   : > { %v1931_v37 = vpop.eup %1930 }
 0x291   : > { %1128 = vadd.xlane.f32.xlu0 %v2414_v41  ;;  %1134 = vadd.xlane.f32.xlu1 %v2416_v42  ;;  %v1086_v47 = vmin.f32 %v1931_v37, 1e+12  ;;  %v2423_v48 = vmax.f32 %v1097_v44, 0.0  ;;  %v1171_v53 = vmul.f32 %v2416_v42, %v2416_v42 }
 0x292   : > { %v1933_v45 = vpop.eup %1932 }
 0x293   : > { %v1087_v46 = vmin.f32 %v1933_v45, 1e+12  ;;  %v1102_v55 = vmul.f32 %v1086_v47, %v2360_v49  ;;  %v1169_v59 = vmul.f32 %v2423_v48, %v2423_v48 }
 0x294   : > { %v1935_v50 = vpop.eup %1934 }
 0x295   : > { %1188 = vadd.xlane.f32.xlu0 %v1170_v40  ;;  %1130 = vadd.xlane.f32.xlu1 %v2423_v48  ;;  %v1084_v51 = vmin.f32 %v1935_v50, 1e+12  ;;  %v2433_v61 = vmax.f32 %v1102_v55, 0.0  ;;  %v1103_v0 = vmul.f32 %v1087_v46, %v2366_v54 }
 0x296   : > { %v1937_v56 = vpop.eup %1936 }
 0x297   : > { %v1085_v60 = vmin.f32 %v1937_v56, 1e+12  ;;  %v1100_v62 = vmul.f32 %v1084_v51, %v2364_v52  ;;  %v2440_v4 = vmax.f32 %v1103_v0, 0.0  ;;  %v1174_v52 = vmul.f32 %v2433_v61, %v2433_v61 }
 0x298   : > { %v1053_v58 = vpop.xlane.xlu0 %1052 }
 0x299   : > { %1938 = vrsqrt.f32 %v1053_v58  ;;  %1184 = vadd.xlane.f32.xlu0 %v1168_v43  ;;  %1190 = vadd.xlane.f32.xlu1 %v1171_v53  ;;  %v2438_v49 = vmax.f32 %v1100_v62, 0.0  ;;  %v1101_v5 = vmul.f32 %v1085_v60, %v2372_v57  ;;  %v1175_v18 = vmul.f32 %v2440_v4, %v2440_v4 }
 0x29b   : > { %v2447_v54 = vmax.f32 %v1101_v5, 0.0  ;;  %v1172_v16 = vmul.f32 %v2438_v49, %v2438_v49 }
 0x29c   : > { %v1049_v1 = vpop.xlane.xlu0 %1048  ;;  %v1055_v2 = vpop.xlane.xlu1 %1054 }
 0x29d   : > { %1140 = vadd.xlane.f32.xlu0 %v2433_v61  ;;  %1186 = vadd.xlane.f32.xlu1 %v1169_v59  ;;  %1940 = vrsqrt.f32 %v1055_v2  ;;  %v1173_v23 = vmul.f32 %v2447_v54, %v2447_v54 }
 0x29e   : > { %1942 = vrsqrt.f32 %v1049_v1 }
 0x2a0   : > { %v1051_v8 = vpop.xlane.xlu1 %1050  ;;  %v1057_v9 = vpop.xlane.xlu0 %1056 }
 0x2a1   : > { %1136 = vadd.xlane.f32.xlu0 %v2438_v49  ;;  %1142 = vadd.xlane.f32.xlu1 %v2440_v4 }
 0x2a4   : > { %v1061_v12 = vpop.xlane.xlu0 %1060  ;;  %v1059_v13 = vpop.xlane.xlu1 %1058 }
 0x2a5   : > { %1944 = vrsqrt.f32 %v1061_v12  ;;  %1196 = vadd.xlane.f32.xlu0 %v1174_v52  ;;  %1138 = vadd.xlane.f32.xlu1 %v2447_v54 }
 0x2a6   : > { %v1939_v15 = vpop.eup %1938  ;;  %1946 = vrsqrt.f32 %v1051_v8 }
 0x2a7   : > { %v1090_v57 = vmin.f32 %v1939_v15, 1e+12  ;;  %1948 = vrsqrt.f32 %v1057_v9 }
 0x2a8   : > { %v1063_v19 = vpop.xlane.xlu1 %1062 }
 0x2a9   : > { %1950 = vrsqrt.f32 %v1063_v19  ;;  %1192 = vadd.xlane.f32.xlu0 %v1172_v16  ;;  %1198 = vadd.xlane.f32.xlu1 %v1175_v18  ;;  %v1106_v20 = vmul.f32 %v1090_v57, %v2376_v63 }
 0x2aa   : > { %v1941_v21 = vpop.eup %1940  ;;  %1952 = vrsqrt.f32 %v1059_v13 }
 0x2ab   : > { %v2455_v22 = vmax.f32 %v1106_v20, 0.0  ;;  %v1091_v24 = vmin.f32 %v1941_v21, 1e+12  ;;  %v1943_v26 = vpop.eup %1942 }
 0x2ac   : > { %v1088_v29 = vmin.f32 %v1943_v26, 1e+12 }
 0x2ad   : > { %1148 = vadd.xlane.f32.xlu0 %v2455_v22  ;;  %1194 = vadd.xlane.f32.xlu1 %v1173_v23  ;;  %v1107_v25 = vmul.f32 %v1091_v24, %v2382_v6 }
 0x2ae   : > { %v1104_v36 = vmul.f32 %v1088_v29, %v2380_v3 }
 0x2af   : > { %v2461_v27 = vmax.f32 %v1107_v25, 0.0 }
 0x2b0   : > { %v2470_v45 = vmax.f32 %v1104_v36, 0.0 }
 0x2b1   : > { %1150 = vadd.xlane.f32.xlu1 %v2461_v27  ;;  %v1179_v51 = vmul.f32 %v2461_v27, %v2461_v27 }
 0x2b2   : > { %v1945_v28 = vpop.eup %1944 }
 0x2b3   : > { %v1947_v63 = vpop.eup %1946  ;;  %v1094_v30 = vmin.f32 %v1945_v28, 1e+12 }
 0x2b4   : > { %v1949_v31 = vpop.eup %1948  ;;  %v1089_v35 = vmin.f32 %v1947_v63, 1e+12 }
 0x2b5   : > { %v1110_v32 = vmul.f32 %v1094_v30, %v2392_v11  ;;  %v1092_v38 = vmin.f32 %v1949_v31, 1e+12 }
 0x2b6   : > { %v1951_v33 = vpop.eup %1950  ;;  %v1105_v50 = vmul.f32 %v1089_v35, %v2390_v10  ;;  %v1176_v10 = vmul.f32 %v2470_v45, %v2470_v45 }
 0x2b7   : > { %v1095_v39 = vmin.f32 %v1951_v33, 1e+12  ;;  %v2466_v44 = vmax.f32 %v1110_v32, 0.0  ;;  %v1953_v6 = vpop.eup %1952  ;;  %v1108_v11 = vmul.f32 %v1092_v38, %v2384_v7 }
 0x2b8   : > { %v1093_v47 = vmin.f32 %v1953_v6, 1e+12  ;;  %v2480_v43 = vmax.f32 %v1105_v50, 0.0 }
 0x2b9   : > { %1156 = vadd.xlane.f32.xlu0 %v2466_v44  ;;  %v1111_v37 = vmul.f32 %v1095_v39, %v2404_v17  ;;  %v2478_v3 = vmax.f32 %v1108_v11, 0.0  ;;  %v1178_v17 = vmul.f32 %v2455_v22, %v2455_v22  ;;  %v1182_v55 = vmul.f32 %v2466_v44, %v2466_v44 }
 0x2ba   : > { %v1109_v46 = vmul.f32 %v1093_v47, %v2398_v14  ;;  %v1177_v53 = vmul.f32 %v2480_v43, %v2480_v43 }
 0x2bb   : > { %v2472_v40 = vmax.f32 %v1111_v37, 0.0  ;;  %v1180_v14 = vmul.f32 %v2478_v3, %v2478_v3 }
 0x2bc   : > { %v2487_v7 = vmax.f32 %v1109_v46, 0.0 }
 0x2bd   : > { %1144 = vadd.xlane.f32.xlu0 %v2470_v45  ;;  %1158 = vadd.xlane.f32.xlu1 %v2472_v40  ;;  %v1183_v58 = vmul.f32 %v2472_v40, %v2472_v40 }
 0x2be   : > { %v1181_v56 = vmul.f32 %v2487_v7, %v2487_v7 }
 0x2c1   : > { %1152 = vadd.xlane.f32.xlu0 %v2478_v3  ;;  %1146 = vadd.xlane.f32.xlu1 %v2480_v43 }
 0x2c5   : > { %1204 = vadd.xlane.f32.xlu0 %v1178_v17  ;;  %1154 = vadd.xlane.f32.xlu1 %v2487_v7 }
 0x2c9   : > { %1200 = vadd.xlane.f32.xlu0 %v1176_v10  ;;  %1206 = vadd.xlane.f32.xlu1 %v1179_v51 }
 0x2cd   : > { %1208 = vadd.xlane.f32.xlu0 %v1180_v14  ;;  %1202 = vadd.xlane.f32.xlu1 %v1177_v53 }
 0x2d1   : > { %1212 = vadd.xlane.f32.xlu0 %v1182_v55  ;;  %1210 = vadd.xlane.f32.xlu1 %v1181_v56 }
 0x2d5   : > { %1214 = vadd.xlane.f32.xlu1 %v1183_v58 }
 0x316   : > { %v1133_v59 = vpop.xlane.xlu0 %1132 }
 0x31a   : > { %v1129_v60 = vpop.xlane.xlu0 %1128  ;;  %v1135_v62 = vpop.xlane.xlu1 %1134 }
 0x31e   : > { %v1189_v0 = vpop.xlane.xlu0 %1188  ;;  %v1131_v1 = vpop.xlane.xlu1 %1130 }
 0x322   : > { %v1185_v2 = vpop.xlane.xlu0 %1184  ;;  %v1191_v5 = vpop.xlane.xlu1 %1190 }
 0x326   : > { %v1141_v8 = vpop.xlane.xlu0 %1140  ;;  %v1187_v9 = vpop.xlane.xlu1 %1186 }
 0x32a   : > { %v1143_v52 = vpop.xlane.xlu1 %1142  ;;  %v1137_v12 = vpop.xlane.xlu0 %1136 }
 0x32e   : > { %v1139_v13 = vpop.xlane.xlu1 %1138  ;;  %v1197_v15 = vpop.xlane.xlu0 %1196 }
 0x332   : > { %v1199_v57 = vpop.xlane.xlu1 %1198  ;;  %v1193_v16 = vpop.xlane.xlu0 %1192 }
 0x336   : > { %v1195_v18 = vpop.xlane.xlu1 %1194  ;;  %v1149_v19 = vpop.xlane.xlu0 %1148 }
 0x337   : > { %v1162_v25 = vadd.f32 %v1149_v19, %v1133_v59 }
 0x339   : > { %v2504_v29 = vmul.f32 0.125, %v1162_v25 }
 0x33a   : > { %v1151_v20 = vpop.xlane.xlu1 %1150 }
 0x33b   : > { %v1163_v63 = vadd.f32 %v1151_v20, %v1135_v62  ;;  %v1242_v35 = vmul.f32 %v2504_v29, %v2504_v29 }
 0x33d   : > { %v2506_v33 = vmul.f32 0.125, %v1163_v63 }
 0x33f   : > { %v1243_v46 = vmul.f32 %v2506_v33, %v2506_v33 }
 0x342   : > { %v1157_v21 = vpop.xlane.xlu0 %1156 }
 0x343   : > { %v1166_v11 = vadd.f32 %v1157_v21, %v1141_v8 }
 0x345   : > { %v2514_v59 = vmul.f32 0.125, %v1166_v11 }
 0x346   : > { %v1145_v23 = vpop.xlane.xlu0 %1144  ;;  %v1159_v24 = vpop.xlane.xlu1 %1158 }
 0x347   : > { %v1160_v47 = vadd.f32 %v1145_v23, %v1129_v60  ;;  %v1167_v56 = vadd.f32 %v1159_v24, %v1143_v52  ;;  %v1304_v23 = vlaneseq }
 0x349   : > { %v2512_v55 = vmul.f32 0.125, %v1160_v47 }
 0x34a   : > { %v1153_v26 = vpop.xlane.xlu0 %1152  ;;  %v1147_v28 = vpop.xlane.xlu1 %1146 }
 0x34b   : > { %v1164_v58 = vadd.f32 %v1153_v26, %v1137_v12  ;;  %v1161_v62 = vadd.f32 %v1147_v28, %v1131_v1  ;;  %v1240_v63 = vmul.f32 %v2512_v55, %v2512_v55  ;;  %v1246_v1 = vmul.f32 %v2514_v59, %v2514_v59 }
 0x34d   : > { %v2518_v25 = vmul.f32 0.125, %v1164_v58  ;;  %v2522_v52 = vmul.f32 0.125, %v1161_v62  ;;  %v1259_v58 = vsub.f32 %v2416_v42, %v2506_v33  ;;  %v1266_v42 = vsub.f32 %v2455_v22, %v2504_v29 }
 0x34e   : > { %v1205_v30 = vpop.xlane.xlu0 %1204  ;;  %v1155_v31 = vpop.xlane.xlu1 %1154 }
 0x34f   : > { %v1218_v32 = vadd.f32 %v1205_v30, %v1189_v0  ;;  %v1165_v12 = vadd.f32 %v1155_v31, %v1139_v13  ;;  %v1241_v31 = vmul.f32 %v2522_v52, %v2522_v52 }
 0x351   : > { %v1234_v36 = vmul.f32 0.125, %v1218_v32  ;;  %v2532_v13 = vmul.f32 0.125, %v1165_v12 }
 0x352   : > { %v1201_v38 = vpop.xlane.xlu0 %1200  ;;  %v1207_v39 = vpop.xlane.xlu1 %1206 }
 0x353   : > { %v1250_v6 = vsub.f32 %v1234_v36, %v1242_v35  ;;  %v1219_v37 = vadd.f32 %v1207_v39, %v1191_v5  ;;  %v1216_v10 = vadd.f32 %v1201_v38, %v1185_v2  ;;  %v2516_v2 = vmul.f32 0.125, %v1167_v56 }
 0x354   : > { %v1244_v35 = vmul.f32 %v2518_v25, %v2518_v25  ;;  %v2530_v38 = vand.u32 127, %v1304_v23 }
 0x355   : > { %v1274_v50 = vadd.f32 1e-05, %v1250_v6  ;;  %v1235_v17 = vmul.f32 0.125, %v1219_v37  ;;  %v1232_v60 = vmul.f32 0.125, %v1216_v10  ;;  %v1247_v36 = vmul.f32 %v2516_v2, %v2516_v2 }
 0x356   : > { %v1209_v51 = vpop.xlane.xlu0 %1208  ;;  %v1203_v14 = vpop.xlane.xlu1 %1202  ;;  %vm1306_vm1 = vcmp.lt.s32.totalorder %v2530_v38, 4  ;;  %v1263_v12 = vsub.f32 %v2440_v4, %v2516_v2 }
 0x357   : > { %1954 = vrsqrt.f32 %v1274_v50  ;;  %v1251_v53 = vsub.f32 %v1235_v17, %v1243_v46  ;;  %v1220_v5 = vadd.f32 %v1209_v51, %v1193_v16  ;;  %v1217_v20 = vadd.f32 %v1203_v14, %v1187_v9 }
 0x358   : > { %v1248_v24 = vsub.f32 %v1232_v60, %v1240_v63  ;;  %v1245_v17 = vmul.f32 %v2532_v13, %v2532_v13 }
 0x359   : > { %v1275_v0 = vadd.f32 1e-05, %v1251_v53  ;;  %v1236_v26 = vmul.f32 0.125, %v1220_v5 }
 0x35a   : > { %v1213_v8 = vpop.xlane.xlu0 %1212  ;;  %v1211_v19 = vpop.xlane.xlu1 %1210  ;;  %v1272_v37 = vadd.f32 1e-05, %v1248_v24  ;;  %v1267_v24 = vsub.f32 %v2461_v27, %v2506_v33  ;;  %v1257_v27 = vsub.f32 %v2423_v48, %v2522_v52  ;;  %v1261_v48 = vsub.f32 %v2447_v54, %v2532_v13 }
 0x35b   : > { %v1222_v21 = vadd.f32 %v1213_v8, %v1197_v15  ;;  %1956 = vrsqrt.f32 %v1275_v0  ;;  %v1233_v15 = vmul.f32 0.125, %v1217_v20  ;;  %v1221_v30 = vadd.f32 %v1211_v19, %v1195_v18 }
 0x35c   : > { %v1252_v47 = vsub.f32 %v1236_v26, %v1244_v35  ;;  %v1262_v8 = vsub.f32 %v2433_v61, %v2514_v59  ;;  %v1256_v61 = vsub.f32 %v2414_v41, %v2512_v55  ;;  %v1260_v41 = vsub.f32 %v2438_v49, %v2518_v25 }
 0x35d   : > { %v1238_v16 = vmul.f32 0.125, %v1222_v21  ;;  %v1249_v18 = vsub.f32 %v1233_v15, %v1241_v31  ;;  %v1237_v11 = vmul.f32 0.125, %v1221_v30  ;;  %v1264_v49 = vsub.f32 %v2470_v45, %v2512_v55 }
 0x35e   : > { %v1215_v9 = vpop.xlane.xlu1 %1214  ;;  %v1276_v14 = vadd.f32 1e-05, %v1252_v47  ;;  %v1268_v45 = vsub.f32 %v2478_v3, %v2518_v25  ;;  %v1265_v54 = vsub.f32 %v2480_v43, %v2522_v52  ;;  %v1270_v3 = vsub.f32 %v2466_v44, %v2514_v59 }
 0x35f   : > { %v1254_v28 = vsub.f32 %v1238_v16, %v1246_v1  ;;  %v1223_v32 = vadd.f32 %v1215_v9, %v1199_v57  ;;  %v1258_v57 = vsub.f32 %v2409_v34, %v2504_v29  ;;  %v1273_v53 = vadd.f32 1e-05, %v1249_v18 }
 0x360   : > { %v1253_v56 = vsub.f32 %v1237_v11, %v1245_v17  ;;  %v1269_v43 = vsub.f32 %v2487_v7, %v2532_v13  ;;  %v1271_v44 = vsub.f32 %v2472_v40, %v2516_v2 }
 0x361   : > { %v1278_v39 = vadd.f32 1e-05, %v1254_v28  ;;  %v1239_v6 = vmul.f32 0.125, %v1223_v32 }
 0x362   : > { %v1277_v60 = vadd.f32 1e-05, %v1253_v56 }
 0x363   : > { %1958 = vrsqrt.f32 %v1278_v39  ;;  %v1255_v50 = vsub.f32 %v1239_v6, %v1247_v36 }
 0x364   : > { %v1955_v46 = vpop.eup %1954  ;;  %1960 = vrsqrt.f32 %v1272_v37 }
 0x365   : > { %v1279_v10 = vadd.f32 1e-05, %v1255_v50  ;;  %v1290_v51 = vmul.f32 %v1955_v46, %v1258_v57  ;;  %v1298_v63 = vmul.f32 %v1955_v46, %v1266_v42 }
 0x367   : > { %1962 = vrsqrt.f32 %v1279_v10  ;;  %v2543_v34 = vsel %vm1306_vm1, %v1290_v51, -1e+30  ;;  %v2570_v29 = vsel %vm1306_vm1, %v1298_v63, -1e+30 }
 0x368   : > { %1327 = vmax.xlane.f32.xlu0 %v2543_v34  ;;  %v1957_v62 = vpop.eup %1956  ;;  %1964 = vrsqrt.f32 %v1276_v14 }
 0x369   : > { %v1291_v0 = vmul.f32 %v1957_v62, %v1259_v58  ;;  %1966 = vrsqrt.f32 %v1273_v53  ;;  %v1299_v9 = vmul.f32 %v1957_v62, %v1267_v24 }
 0x36a   : > { %1968 = vrsqrt.f32 %v1277_v60 }
 0x36b   : > { %v2550_v5 = vsel %vm1306_vm1, %v1291_v0, -1e+30  ;;  %v2588_v28 = vsel %vm1306_vm1, %v1299_v9, -1e+30 }
 0x36c   : > { %1329 = vmax.xlane.f32.xlu1 %v2550_v5 }
 0x370   : > { %v1959_v19 = vpop.eup %1958 }
 0x371   : > { %v1294_v20 = vmul.f32 %v1959_v19, %v1262_v8  ;;  %v1961_v21 = vpop.eup %1960  ;;  %v1302_v18 = vmul.f32 %v1959_v19, %v1270_v3 }
 0x372   : > { %v1288_v4 = vmul.f32 %v1961_v21, %v1256_v61  ;;  %v1296_v39 = vmul.f32 %v1961_v21, %v1264_v49 }
 0x373   : > { %v2559_v23 = vsel %vm1306_vm1, %v1294_v20, -1e+30  ;;  %v2638_v7 = vsel %vm1306_vm1, %v1302_v18, -1e+30 }
 0x374   : > { %v1963_v1 = vpop.eup %1962  ;;  %1335 = vmax.xlane.f32.xlu0 %v2559_v23  ;;  %v2584_v33 = vsel %vm1306_vm1, %v1288_v4, -1e+30  ;;  %v2612_v55 = vsel %vm1306_vm1, %v1296_v39, -1e+30 }
 0x375   : > { %v1295_v16 = vmul.f32 %v1963_v1, %v1263_v12  ;;  %v1965_v22 = vpop.eup %1964  ;;  %v1303_v13 = vmul.f32 %v1963_v1, %v1271_v44 }
 0x376   : > { %v1967_v15 = vpop.eup %1966  ;;  %v1292_v30 = vmul.f32 %v1965_v22, %v1260_v41  ;;  %v1300_v47 = vmul.f32 %v1965_v22, %v1268_v45 }
 0x377   : > { %v2574_v26 = vsel %vm1306_vm1, %v1295_v16, -1e+30  ;;  %v1289_v32 = vmul.f32 %v1967_v15, %v1257_v27  ;;  %v1969_v35 = vpop.eup %1968  ;;  %v1297_v57 = vmul.f32 %v1967_v15, %v1265_v54  ;;  %v2648_v50 = vsel %vm1306_vm1, %v1303_v13, -1e+30 }
 0x378   : > { %1343 = vmax.xlane.f32.xlu0 %v2570_v29  ;;  %1337 = vmax.xlane.f32.xlu1 %v2574_v26  ;;  %v2598_v36 = vsel %vm1306_vm1, %v1292_v30, -1e+30  ;;  %v1293_v6 = vmul.f32 %v1969_v35, %v1261_v48  ;;  %v2626_v25 = vsel %vm1306_vm1, %v1300_v47, -1e+30  ;;  %v1301_v11 = vmul.f32 %v1969_v35, %v1269_v43 }
 0x379   : > { %v2602_v31 = vsel %vm1306_vm1, %v1289_v32, -1e+30  ;;  %v2630_v52 = vsel %vm1306_vm1, %v1297_v57, -1e+30 }
 0x37a   : > { %v2616_v37 = vsel %vm1306_vm1, %v1293_v6, -1e+30  ;;  %v2642_v59 = vsel %vm1306_vm1, %v1301_v11, -1e+30 }
 0x37c   : > { %1323 = vmax.xlane.f32.xlu0 %v2584_v33  ;;  %1345 = vmax.xlane.f32.xlu1 %v2588_v28 }
 0x380   : > { %1331 = vmax.xlane.f32.xlu0 %v2598_v36  ;;  %1325 = vmax.xlane.f32.xlu1 %v2602_v31 }
 0x384   : > { %1339 = vmax.xlane.f32.xlu0 %v2612_v55  ;;  %1333 = vmax.xlane.f32.xlu1 %v2616_v37 }
 0x388   : > { %1347 = vmax.xlane.f32.xlu0 %v2626_v25  ;;  %1341 = vmax.xlane.f32.xlu1 %v2630_v52 }
 0x38c   : > { %1351 = vmax.xlane.f32.xlu0 %v2638_v7  ;;  %1349 = vmax.xlane.f32.xlu1 %v2642_v59 }
 0x390   : > { %1353 = vmax.xlane.f32.xlu1 %v2648_v50 }
 0x3f1   : > { %v1328_v40 = vpop.xlane.xlu0 %1327 }
 0x3f2   : > { %v1357_v2 = vsub.f32 %v2543_v34, %v1328_v40 }
 0x3f4   : > { %v1375_v46 = vmul.f32 1.442695, %v1357_v2 }
 0x3f5   : > { %v1330_v17 = vpop.xlane.xlu1 %1329 }
 0x3f6   : > { %1970 = vpow2.f32 %v1375_v46  ;;  %v1358_v10 = vsub.f32 %v2550_v5, %v1330_v17 }
 0x3f8   : > { %v1377_v51 = vmul.f32 1.442695, %v1358_v10 }
 0x3fa   : > { %1972 = vpow2.f32 %v1377_v51 }
 0x3fd   : > { %v1336_v14 = vpop.xlane.xlu0 %1335 }
 0x3fe   : > { %v1361_v53 = vsub.f32 %v2559_v23, %v1336_v14 }
 0x400   : > { %v1383_v56 = vmul.f32 1.442695, %v1361_v53 }
 0x401   : > { %v1344_v58 = vpop.xlane.xlu0 %1343  ;;  %v1338_v38 = vpop.xlane.xlu1 %1337 }
 0x402   : > { %1974 = vpow2.f32 %v1383_v56  ;;  %v1365_v62 = vsub.f32 %v2570_v29, %v1344_v58  ;;  %v1362_v0 = vsub.f32 %v2574_v26, %v1338_v38 }
 0x403   : > { %v2656_v60 = vpop.eup %1970 }
 0x404   : > { %v1391_v34 = vmul.f32 1.442695, %v1365_v62  ;;  %v1385_v8 = vmul.f32 1.442695, %v1362_v0  ;;  %1407 = vadd.xlane.f32.xlu0 %v2656_v60 }
 0x405   : > { %v1324_v5 = vpop.xlane.xlu0 %1323  ;;  %v1346_v19 = vpop.xlane.xlu1 %1345 }
 0x406   : > { %1976 = vpow2.f32 %v1391_v34  ;;  %v1355_v20 = vsub.f32 %v2584_v33, %v1324_v5  ;;  %v1366_v42 = vsub.f32 %v2588_v28, %v1346_v19 }
 0x407   : > { %1978 = vpow2.f32 %v1385_v8  ;;  %v2661_v21 = vpop.eup %1972 }
 0x408   : > { %v1371_v23 = vmul.f32 1.442695, %v1355_v20  ;;  %v1393_v63 = vmul.f32 1.442695, %v1366_v42  ;;  %1409 = vadd.xlane.f32.xlu1 %v2661_v21 }
 0x409   : > { %v1332_v12 = vpop.xlane.xlu0 %1331  ;;  %v1326_v1 = vpop.xlane.xlu1 %1325 }
 0x40a   : > { %1980 = vpow2.f32 %v1371_v23  ;;  %v1359_v16 = vsub.f32 %v2598_v36, %v1332_v12  ;;  %v1356_v61 = vsub.f32 %v2602_v31, %v1326_v1 }
 0x40b   : > { %1982 = vpow2.f32 %v1393_v63 }
 0x40c   : > { %v1379_v24 = vmul.f32 1.442695, %v1359_v16  ;;  %v1373_v22 = vmul.f32 1.442695, %v1356_v61 }
 0x40d   : > { %v1340_v29 = vpop.xlane.xlu0 %1339  ;;  %v1334_v26 = vpop.xlane.xlu1 %1333 }
 0x40e   : > { %1984 = vpow2.f32 %v1379_v24  ;;  %v1363_v4 = vsub.f32 %v2612_v55, %v1340_v29  ;;  %v1360_v9 = vsub.f32 %v2616_v37, %v1334_v26 }
 0x40f   : > { %v2668_v15 = vpop.eup %1974  ;;  %1986 = vpow2.f32 %v1373_v22 }
 0x410   : > { %v1387_v41 = vmul.f32 1.442695, %v1363_v4  ;;  %v1381_v27 = vmul.f32 1.442695, %v1360_v9  ;;  %1415 = vadd.xlane.f32.xlu0 %v2668_v15 }
 0x411   : > { %v1348_v33 = vpop.xlane.xlu0 %1347  ;;  %v1342_v28 = vpop.xlane.xlu1 %1341 }
 0x412   : > { %1988 = vpow2.f32 %v1387_v41  ;;  %v1367_v30 = vsub.f32 %v2626_v25, %v1348_v33  ;;  %v1364_v32 = vsub.f32 %v2630_v52, %v1342_v28 }
 0x413   : > { %v2673_v35 = vpop.eup %1976  ;;  %1990 = vpow2.f32 %v1381_v27 }
 0x414   : > { %v2675_v49 = vpop.eup %1978  ;;  %v1395_v48 = vmul.f32 1.442695, %v1367_v30  ;;  %v1389_v36 = vmul.f32 1.442695, %v1364_v32  ;;  %1423 = vadd.xlane.f32.xlu0 %v2673_v35 }
 0x415   : > { %1417 = vadd.xlane.f32.xlu1 %v2675_v49  ;;  %v1352_v31 = vpop.xlane.xlu0 %1351  ;;  %v1350_v39 = vpop.xlane.xlu1 %1349 }
 0x416   : > { %1992 = vpow2.f32 %v1395_v48  ;;  %v1369_v6 = vsub.f32 %v2638_v7, %v1352_v31  ;;  %v1368_v45 = vsub.f32 %v2642_v59, %v1350_v39 }
 0x417   : > { %v2681_v54 = vpop.eup %1980  ;;  %1994 = vpow2.f32 %v1389_v36 }
 0x418   : > { %v2683_v55 = vpop.eup %1982  ;;  %v1399_v37 = vmul.f32 1.442695, %v1369_v6  ;;  %v1397_v47 = vmul.f32 1.442695, %v1368_v45  ;;  %1403 = vadd.xlane.f32.xlu0 %v2681_v54 }
 0x419   : > { %1425 = vadd.xlane.f32.xlu1 %v2683_v55  ;;  %v1354_v57 = vpop.xlane.xlu1 %1353 }
 0x41a   : > { %1996 = vpow2.f32 %v1399_v37  ;;  %v1370_v3 = vsub.f32 %v2648_v50, %v1354_v57 }
 0x41b   : > { %v2688_v43 = vpop.eup %1984  ;;  %1998 = vpow2.f32 %v1397_v47 }
 0x41c   : > { %v2690_v25 = vpop.eup %1986  ;;  %v1401_v52 = vmul.f32 1.442695, %v1370_v3  ;;  %1411 = vadd.xlane.f32.xlu0 %v2688_v43 }
 0x41d   : > { %1405 = vadd.xlane.f32.xlu1 %v2690_v25 }
 0x41e   : > { %2000 = vpow2.f32 %v1401_v52 }
 0x41f   : > { %v2694_v18 = vpop.eup %1988 }
 0x420   : > { %v2696_v11 = vpop.eup %1990  ;;  %1419 = vadd.xlane.f32.xlu0 %v2694_v18 }
 0x421   : > { %1413 = vadd.xlane.f32.xlu1 %v2696_v11 }
 0x423   : > { %v2700_v44 = vpop.eup %1992 }
 0x424   : > { %v2702_v7 = vpop.eup %1994  ;;  %1427 = vadd.xlane.f32.xlu0 %v2700_v44 }
 0x425   : > { %1421 = vadd.xlane.f32.xlu1 %v2702_v7 }
 0x427   : > { %v2706_v59 = vpop.eup %1996 }
 0x428   : > { %v2708_v13 = vpop.eup %1998  ;;  %1431 = vadd.xlane.f32.xlu0 %v2706_v59 }
 0x429   : > { %1429 = vadd.xlane.f32.xlu1 %v2708_v13 }
 0x42b   : > { %v2712_v50 = vpop.eup %2000 }
 0x42d   : > { %1433 = vadd.xlane.f32.xlu1 %v2712_v50 }
 0x48d   : > { %v1408_v40 = vpop.xlane.xlu0 %1407 }
 0x48e   : > { %2002 = vrcp.f32 %v1408_v40 }
 0x491   : > { %v1410_v2 = vpop.xlane.xlu1 %1409 }
 0x492   : > { %2004 = vrcp.f32 %v1410_v2 }
 0x499   : > { %v1416_v46 = vpop.xlane.xlu0 %1415 }
 0x49a   : > { %2006 = vrcp.f32 %v1416_v46 }
 0x49b   : > { %v2003_v17 = vpop.eup %2002 }
 0x49c   : > { %v1440_v10 = vmul.f32 %v2003_v17, %v2656_v60 }
 0x49d   : > { %v1424_v51 = vpop.xlane.xlu0 %1423 }
 0x49e   : > { %1469 = vst [vmem:[%s2717_s30 + $0x10] sm:$0xff] %v1440_v10  ;;  %2008 = vrcp.f32 %v1424_v51  ;;  %v1418_v14 = vpop.xlane.xlu1 %1417 }
 0x49f   : > { %2010 = vrcp.f32 %v1418_v14  ;;  %v2005_v53 = vpop.eup %2004 }
 0x4a0   : > { %v1442_v56 = vmul.f32 %v2005_v53, %v2661_v21 }
 0x4a1   : > { %v1404_v58 = vpop.xlane.xlu0 %1403 }
 0x4a2   : > { %2012 = vrcp.f32 %v1404_v58  ;;  %v1426_v38 = vpop.xlane.xlu1 %1425  ;;  %1470 = vst [vmem:[%s2717_s30 + $0x18] sm:$0xff] %v1442_v56 }
 0x4a3   : > { %2014 = vrcp.f32 %v1426_v38 }
 0x4a5   : > { %v1412_v62 = vpop.xlane.xlu0 %1411 }
 0x4a6   : > { %2016 = vrcp.f32 %v1412_v62  ;;  %v1406_v0 = vpop.xlane.xlu1 %1405 }
 0x4a7   : > { %v2007_v60 = vpop.eup %2006  ;;  %2018 = vrcp.f32 %v1406_v0 }
 0x4a8   : > { %v1448_v34 = vmul.f32 %v2007_v60, %v2668_v15 }
 0x4a9   : > { %v1420_v8 = vpop.xlane.xlu0 %1419 }
 0x4aa   : > { %1473 = vst [vmem:[%s2717_s30 + $0x30] sm:$0xff] %v1448_v34  ;;  %2020 = vrcp.f32 %v1420_v8  ;;  %v1414_v5 = vpop.xlane.xlu1 %1413 }
 0x4ab   : > { %v2009_v19 = vpop.eup %2008  ;;  %2022 = vrcp.f32 %v1414_v5 }
 0x4ac   : > { %v2011_v20 = vpop.eup %2010  ;;  %v1456_v42 = vmul.f32 %v2009_v19, %v2673_v35 }
 0x4ad   : > { %v1450_v21 = vmul.f32 %v2011_v20, %v2675_v49  ;;  %v1428_v23 = vpop.xlane.xlu0 %1427 }
 0x4ae   : > { %1477 = vst [vmem:[%s2717_s30 + $0x50] sm:$0xff] %v1456_v42  ;;  %2024 = vrcp.f32 %v1428_v23  ;;  %v1422_v63 = vpop.xlane.xlu1 %1421 }
 0x4af   : > { %v2013_v12 = vpop.eup %2012  ;;  %1474 = vst [vmem:[%s2717_s30 + $0x38] sm:$0xff] %v1450_v21  ;;  %2026 = vrcp.f32 %v1422_v63 }
 0x4b0   : > { %v2015_v1 = vpop.eup %2014  ;;  %v1436_v16 = vmul.f32 %v2013_v12, %v2681_v54 }
 0x4b1   : > { %v1458_v61 = vmul.f32 %v2015_v1, %v2683_v55  ;;  %v1432_v24 = vpop.xlane.xlu0 %1431 }
 0x4b2   : > { %1467 = vst [vmem:[%s2717_s30] sm:$0xff] %v1436_v16  ;;  %2028 = vrcp.f32 %v1432_v24  ;;  %v1430_v22 = vpop.xlane.xlu1 %1429 }
 0x4b3   : > { %v2017_v29 = vpop.eup %2016  ;;  %1478 = vst [vmem:[%s2717_s30 + $0x58] sm:$0xff] %v1458_v61  ;;  %2030 = vrcp.f32 %v1430_v22 }
 0x4b4   : > { %v2019_v26 = vpop.eup %2018  ;;  %v1444_v4 = vmul.f32 %v2017_v29, %v2688_v43 }
 0x4b5   : > { %v1438_v9 = vmul.f32 %v2019_v26, %v2690_v25 }
 0x4b6   : > { %1471 = vst [vmem:[%s2717_s30 + $0x20] sm:$0xff] %v1444_v4  ;;  %v1434_v15 = vpop.xlane.xlu1 %1433 }
 0x4b7   : > { %v2021_v41 = vpop.eup %2020  ;;  %1468 = vst [vmem:[%s2717_s30 + $0x8] sm:$0xff] %v1438_v9  ;;  %2032 = vrcp.f32 %v1434_v15 }
 0x4b8   : > { %v2023_v27 = vpop.eup %2022  ;;  %v1452_v33 = vmul.f32 %v2021_v41, %v2694_v18 }
 0x4b9   : > { %v1446_v28 = vmul.f32 %v2023_v27, %v2696_v11 }
 0x4ba   : > { %1475 = vst [vmem:[%s2717_s30 + $0x40] sm:$0xff] %v1452_v33 }
 0x4bb   : > { %v2025_v30 = vpop.eup %2024  ;;  %1472 = vst [vmem:[%s2717_s30 + $0x28] sm:$0xff] %v1446_v28 }
 0x4bc   : > { %v2027_v32 = vpop.eup %2026  ;;  %v1460_v35 = vmul.f32 %v2025_v30, %v2700_v44 }
 0x4bd   : > { %v1454_v49 = vmul.f32 %v2027_v32, %v2702_v7 }
 0x4be   : > { %1479 = vst [vmem:[%s2717_s30 + $0x60] sm:$0xff] %v1460_v35 }
 0x4bf   : > { %v2029_v48 = vpop.eup %2028  ;;  %1476 = vst [vmem:[%s2717_s30 + $0x48] sm:$0xff] %v1454_v49 }
 0x4c0   : > { %v2031_v36 = vpop.eup %2030  ;;  %v1464_v31 = vmul.f32 %v2029_v48, %v2706_v59 }
 0x4c1   : > { %v1462_v39 = vmul.f32 %v2031_v36, %v2708_v13 }
 0x4c2   : > { %1481 = vst [vmem:[%s2717_s30 + $0x70] sm:$0xff] %v1464_v31 }
 0x4c3   : > { %1480 = vst [vmem:[%s2717_s30 + $0x68] sm:$0xff] %v1462_v39 }
 0x4c4   : > { %v2033_v6 = vpop.eup %2032 }
 0x4c5   : > { %v1466_v45 = vmul.f32 %v2033_v6, %v2712_v50 }
 0x4c7   : > { %1482 = vst [vmem:[%s2717_s30 + $0x78] sm:$0xff] %v1466_v45 }
 0x4c8   : > { %s1671_s6 = sshll.u32 %s2076_s18, 10  ;;  %s1507_s7 = sshll.u32 %s2717_s30, 4  ;;  %s1508_s7 = int_to_ptr.vmem [resolvable:$true] %s1507_s7 }
 0x4c9   : > { %s1496_s10 = scalar_lea.hbm %s2797_s4, %s1671_s6  ;;  %s2086_s11 = smov 1024  }
 0x4ca   : > { %1846 = sst [smem:[#allocation6]] (%p2156_p5), %s2086_s11  ;;  %s2087_s12 = smov 2048  }
 0x4cb   : > { %1847 = sst [smem:[#allocation6 + $0x1]] (%p2156_p5), %s2087_s12  ;;  %s2088_s13 = smov 8  }
 0x4cc   : > { %1848 = sst [smem:[#allocation6 + $0x2]] (%p2156_p5), %s2088_s13  ;;  %s2089_s14 = smov 128  }
 0x4cd   : > { %1849 = sst [smem:[#allocation6 + $0x3]] (%p2156_p5), %s2089_s14  ;;  %s2090_s18 = smov 131072  }
 0x4ce   : > { %1850 = sst [smem:[#allocation6 + $0x4]] (%p2156_p5), %s2089_s14  ;;  %s2091_s21 = smov 0  }
 0x4cf   : > { %1851 = sst [smem:[#allocation6 + $0x5]] (%p2156_p5), %s2088_s13 }
 0x4d0   : > { %1852 = dma.general (%p2156_p5), %s1508_s7, 2048, %s1496_s10, %s1484_s5, %s2090_s18, [#allocation6], %s2091_s21, 0  }
 0x4d1 PF: > { %s1535_s22 = sand.u32 1, %s2064_s15   ;;  %p1855_p0 = pnand %p1617_p10, %p2167_p9 }
 0x4d2   : > { %s1536_s24 = scalar_lea.sflag [#allocation4], %s1535_s22 }
 0x4d3   : > { %p1856_p1 = pneg %p1855_p0 }
 0x4d5   : > { %2059 = dma.done.wait (%p1856_p1), %s1536_s24, 2048  }
 0x4d6   : > { %2061 = vsyncadd (%p1856_p1), %s1536_s24, 4294965248  ;;  %s17_s20 = sadd.s32 1, %s2084_s20   ;;  %s2800_s15 = smov %s2068_s16 }
 0x4d7   : > { %p14_p2 = scmp.ge.s32.totalorder %s17_s20, 4   ;;  %s2801_s16 = smov %s2072_s17 }
 0x4d8   : > { %s2802_s17 = smov %s2165_s27  ;;  %s2803_s18 = smov %s2080_s19 }
 0x4d9   : > { %s2804_s19 = smov %s2806_s23  ;;  %16 = sbr.rel (!%p14_p2) target bundleno = 4 (0x4), region = 133 }
 0x4de   :  { %1541 = vsyncpa [#allocation4], 1 }
 0x4df   :  { %1543 = vsyncpa [#allocation4 + $0x1], 1 }

</bundles_post_ra>
